<compile_context>
chip_gen: v7x
topology: tpu7x:2x2x1
jax: 0.10.0
libtpu: 0.0.40
codegen_flags: <defaults>
</compile_context>

<pallas_src>
import functools
from typing import List, Sequence, Tuple

import jax
import jax.numpy as jnp
from jax.experimental import pallas as pl
from jax.experimental.pallas import tpu as pltpu

_LANE = 128      # vreg lane width
_SUBLANE = 8     # vreg sublane count (f32)


def _round_up(x: int, m: int) -> int:
    return (x + m - 1) // m * m


# ----------------------------------------------------------------------------
# Fused Pallas kernel: the whole MLP in one call (or one batch tile per
# grid step). Intermediate activations stay in vregs/VMEM.
#   alpha_ref : SMEM (H,)        PReLU slopes for the hidden layers
#   x_ref     : VMEM (Bt, Dp)    input tile
#   w_ref     : VMEM (L, Dp, Dp) packed, pre-padded weights
#   b_ref     : VMEM (L, 1, Dp)  packed, pre-padded biases
#   o_ref     : VMEM (Bt, Dp)    output tile
# ----------------------------------------------------------------------------
def _fused_mlp_kernel(alpha_ref, x_ref, w_ref, b_ref, o_ref, *,
                      n_layers: int, use_bf16: bool):
    h = x_ref[...]                                      # (Bt, Dp) f32
    for i in range(n_layers):                           # statically unrolled
        w = w_ref[i]                                    # (Dp, Dp), static index
        if use_bf16:
            # v6e/v7x MXU is bf16-native; only worth it at scaled-up widths.
            y = jnp.dot(h.astype(jnp.bfloat16), w.astype(jnp.bfloat16),
                        preferred_element_type=jnp.float32)
        else:
            y = jnp.dot(h, w, preferred_element_type=jnp.float32)
        y = y + b_ref[i]                                # broadcast (1, Dp)
        if i == n_layers - 1:
            h = jax.nn.sigmoid(y)                       # final activation (EUP)
        else:
            a = alpha_ref[i]                            # scalar slope from SMEM
            h = jnp.where(y > 0, y, a * y)              # PReLU, f32 on VPU
    o_ref[...] = h.astype(o_ref.dtype)


# ----------------------------------------------------------------------------
# One-time parameter preparation (NOT on the inference path): pad every layer
# to the common width Dp and pack into two arrays + one SMEM alpha vector.
# ----------------------------------------------------------------------------
def prepare_params(weights: Sequence[jax.Array],
                   biases: Sequence[jax.Array],
                   alphas: jax.Array
                   ) -> Tuple[jax.Array, jax.Array, jax.Array]:
    dims = [int(weights[0].shape[0])] + [int(w.shape[1]) for w in weights]
    dp = max(_round_up(d, _LANE) for d in dims)
    w_packed = jnp.stack([
        jnp.pad(jnp.asarray(w, jnp.float32),
                ((0, dp - w.shape[0]), (0, dp - w.shape[1])))
        for w in weights])                              # (L, Dp, Dp)
    b_packed = jnp.stack([
        jnp.pad(jnp.asarray(b, jnp.float32),
                ((0, dp - b.shape[0]),)).reshape(1, dp)
        for b in biases])                               # (L, 1, Dp)
    alphas_smem = jnp.asarray(alphas, jnp.float32).reshape(-1)
    if alphas_smem.shape[0] == 0:                       # single-layer net
        alphas_smem = jnp.zeros((1,), jnp.float32)
    return w_packed, b_packed, alphas_smem


# ----------------------------------------------------------------------------
# Forward: pad x, run one fused pallas_call, strip padding.
# ----------------------------------------------------------------------------
def _run_padded(x_p, w_packed, b_packed, alphas, *, n_layers, use_bf16, m_tile):
    bp, dp = x_p.shape
    l = w_packed.shape[0]
    kernel = functools.partial(_fused_mlp_kernel,
                               n_layers=n_layers, use_bf16=use_bf16)
    if m_tile is None:
        # Small batch: single invocation, everything VMEM-resident, no grid.
        return pl.pallas_call(
            kernel,
            out_shape=jax.ShapeDtypeStruct((bp, dp), jnp.float32),
            in_specs=[pl.BlockSpec(memory_space=pltpu.MemorySpace.SMEM),
                      pl.BlockSpec(memory_space=pltpu.MemorySpace.VMEM),
                      pl.BlockSpec(memory_space=pltpu.MemorySpace.VMEM),
                      pl.BlockSpec(memory_space=pltpu.MemorySpace.VMEM)],
            out_specs=pl.BlockSpec(memory_space=pltpu.MemorySpace.VMEM),
        )(alphas, x_p, w_packed, b_packed)
    # Large batch: tile the batch dim, mark it parallel (2 TCs on v7x);
    # weights/biases stay VMEM-resident across the grid (index_map -> 0).
    return pl.pallas_call(
        kernel,
        out_shape=jax.ShapeDtypeStruct((bp, dp), jnp.float32),
        grid=(bp // m_tile,),
        in_specs=[pl.BlockSpec(memory_space=pltpu.MemorySpace.SMEM),
                  pl.BlockSpec((m_tile, dp), lambda m: (m, 0)),
                  pl.BlockSpec((l, dp, dp), lambda m: (0, 0, 0)),
                  pl.BlockSpec((l, 1, dp), lambda m: (0, 0, 0))],
        out_specs=pl.BlockSpec((m_tile, dp), lambda m: (m, 0)),
        compiler_params=pltpu.CompilerParams(
            dimension_semantics=("parallel",)),
    )(alphas, x_p, w_packed, b_packed)


@functools.partial(jax.jit, static_argnames=("n_out",))
def fully_connected_net(x: jax.Array,
                        w_packed: jax.Array,
                        b_packed: jax.Array,
                        alphas: jax.Array,
                        n_out: int) -> jax.Array:
    batch, n_in = x.shape
    n_layers, dp, _ = w_packed.shape
    # Batch grid only when it pays off; at small batch a grid is pure overhead.
    m_tile = 256 if batch > 512 else None
    bp = _round_up(batch, m_tile if m_tile is not None else _SUBLANE)
    # Only per-call padding left on the hot path (input itself).
    # TODO(synk): callers that can hold x / outputs in padded layout can skip
    # this pad and the final slice entirely.
    x_p = jnp.pad(x.astype(jnp.float32), ((0, bp - batch), (0, dp - n_in)))
    # bf16 MXU operands only once widths are large enough to matter
    # (v6e/v7x MXU is bf16-native; vector math stays f32 for v5e VPU/EUP).
    use_bf16 = dp >= 512
    out_p = _run_padded(x_p, w_packed, b_packed, alphas,
                        n_layers=n_layers, use_bf16=use_bf16, m_tile=m_tile)
    return out_p[:batch, :n_out]
    # TODO(synk): for much wider nets (total padded weights > ~30-48 MiB on
    # v7x's 64 MiB VMEM) switch to per-layer weight streaming via
    # pltpu.emit_pipeline / a grid axis over layers.


# ----------------------------------------------------------------------------
# Parameter construction (deterministic: xavier-uniform weights, PyTorch-style
# uniform bias, PReLU alpha = 0.25).
# ----------------------------------------------------------------------------
def init_params(shapes: List[int], key: jax.Array
                ) -> Tuple[List[jax.Array], List[jax.Array], jax.Array]:
    weights, biases = [], []
    for n_in, n_out in zip(shapes[:-1], shapes[1:]):
        key, kw, kb = jax.random.split(key, 3)
        limit = (6.0 / (n_in + n_out)) ** 0.5            # xavier_uniform
        w = jax.random.uniform(kw, (n_in, n_out), jnp.float32, -limit, limit)
        bbound = 1.0 / (n_in ** 0.5)                     # nn.Linear default bias init
        b = jax.random.uniform(kb, (n_out,), jnp.float32, -bbound, bbound)
        weights.append(w)
        biases.append(b)
    n_hidden = max(len(weights) - 1, 1)
    alphas = jnp.full((n_hidden,), 0.25, dtype=jnp.float32)  # nn.PReLU default
    return weights, biases, alphas


# ----------------------------------------------------------------------------
if __name__ == "__main__":
    shapes = [32, 64, 48, 16]   # FullyConnectedNet([32, 64, 48, 16])
    batch = 4

    key = jax.random.PRNGKey(0)
    key, kx = jax.random.split(key)
    x = jax.random.normal(kx, (batch, shapes[0]), dtype=jnp.float32)

    weights, biases, alphas = init_params(shapes, key)

    # One-time packing/padding (outside the inference path).
    w_packed, b_packed, alphas_smem = prepare_params(weights, biases, alphas)

    out = fully_connected_net(x, w_packed, b_packed, alphas_smem,
                              n_out=shapes[-1])
    out = jax.block_until_ready(out)

    # Pure-JAX reference check.
    ref = x
    for i, (w, b) in enumerate(zip(weights, biases)):
        ref = ref @ w + b
        if i == len(weights) - 1:
            ref = jax.nn.sigmoid(ref)
        else:
            ref = jnp.where(ref > 0, ref, alphas[i] * ref)
    assert out.shape == (batch, shapes[-1])
    assert jnp.allclose(out, ref, atol=1e-5, rtol=1e-5), (
        f"max abs err {jnp.max(jnp.abs(out - ref))}")

    print("KERNEL_OK")
</pallas_src>

<mosaic_0001>
module attributes {stable_mosaic.version = 11 : i64} {
  func.func @_fused_mlp_kernel(%arg0: memref<2xf32, #tpu.memory_space<smem>>, %arg1: memref<8x128xf32, #tpu.memory_space<vmem>>, %arg2: memref<3x128x128xf32, #tpu.memory_space<vmem>>, %arg3: memref<3x1x128xf32, #tpu.memory_space<vmem>>, %arg4: memref<8x128xf32, #tpu.memory_space<vmem>>) attributes {dimension_semantics = [], scalar_prefetch = 0 : i64, scratch_operands = 0 : i64, tpu.core_type = #tpu.core_type<tc>} {
    %c0 = arith.constant 0 : index
    %c0_0 = arith.constant 0 : index
    %0 = vector.load %arg1[%c0, %c0_0] : memref<8x128xf32, #tpu.memory_space<vmem>>, vector<8x128xf32>
    %c0_1 = arith.constant 0 : index
    %c0_2 = arith.constant 0 : index
    %c0_3 = arith.constant 0 : index
    %1 = vector.load %arg2[%c0_1, %c0_2, %c0_3] : memref<3x128x128xf32, #tpu.memory_space<vmem>>, vector<1x128x128xf32>
    %2 = vector.shape_cast %1 : vector<1x128x128xf32> to vector<128x128xf32>
    %cst = arith.constant dense<0.000000e+00> : vector<8x128xf32>
    %3 = tpu.matmul %0, %2, %cst {dimension_numbers = #tpu.dot_dimension_numbers<[1], [0], [0], [1], [0, 0, 1, 1], [], []>} : vector<8x128xf32>, vector<128x128xf32>, vector<8x128xf32> -> vector<8x128xf32>
    %c0_4 = arith.constant 0 : index
    %c0_5 = arith.constant 0 : index
    %c0_6 = arith.constant 0 : index
    %4 = vector.load %arg3[%c0_4, %c0_5, %c0_6] : memref<3x1x128xf32, #tpu.memory_space<vmem>>, vector<1x1x128xf32>
    %5 = vector.shape_cast %4 : vector<1x1x128xf32> to vector<1x128xf32>
    %6 = vector.broadcast %5 : vector<1x128xf32> to vector<8x128xf32>
    %7 = arith.addf %3, %6 : vector<8x128xf32>
    %c0_7 = arith.constant 0 : index
    %8 = memref.load %arg0[%c0_7] : memref<2xf32, #tpu.memory_space<smem>>
    %cst_8 = arith.constant 0.000000e+00 : f32
    %9 = vector.broadcast %cst_8 : f32 to vector<8x128xf32>
    %10 = arith.cmpf ogt, %7, %9 : vector<8x128xf32>
    %11 = vector.broadcast %8 : f32 to vector<8x128xf32>
    %12 = arith.mulf %11, %7 : vector<8x128xf32>
    %13 = arith.select %10, %7, %12 : vector<8x128xi1>, vector<8x128xf32>
    %c1 = arith.constant 1 : index
    %c0_9 = arith.constant 0 : index
    %c0_10 = arith.constant 0 : index
    %14 = vector.load %arg2[%c1, %c0_9, %c0_10] : memref<3x128x128xf32, #tpu.memory_space<vmem>>, vector<1x128x128xf32>
    %15 = vector.shape_cast %14 : vector<1x128x128xf32> to vector<128x128xf32>
    %cst_11 = arith.constant dense<0.000000e+00> : vector<8x128xf32>
    %16 = tpu.matmul %13, %15, %cst_11 {dimension_numbers = #tpu.dot_dimension_numbers<[1], [0], [0], [1], [0, 0, 1, 1], [], []>} : vector<8x128xf32>, vector<128x128xf32>, vector<8x128xf32> -> vector<8x128xf32>
    %c1_12 = arith.constant 1 : index
    %c0_13 = arith.constant 0 : index
    %c0_14 = arith.constant 0 : index
    %17 = vector.load %arg3[%c1_12, %c0_13, %c0_14] : memref<3x1x128xf32, #tpu.memory_space<vmem>>, vector<1x1x128xf32>
    %18 = vector.shape_cast %17 : vector<1x1x128xf32> to vector<1x128xf32>
    %19 = vector.broadcast %18 : vector<1x128xf32> to vector<8x128xf32>
    %20 = arith.addf %16, %19 : vector<8x128xf32>
    %c1_15 = arith.constant 1 : index
    %21 = memref.load %arg0[%c1_15] : memref<2xf32, #tpu.memory_space<smem>>
    %cst_16 = arith.constant 0.000000e+00 : f32
    %22 = vector.broadcast %cst_16 : f32 to vector<8x128xf32>
    %23 = arith.cmpf ogt, %20, %22 : vector<8x128xf32>
    %24 = vector.broadcast %21 : f32 to vector<8x128xf32>
    %25 = arith.mulf %24, %20 : vector<8x128xf32>
    %26 = arith.select %23, %20, %25 : vector<8x128xi1>, vector<8x128xf32>
    %c2 = arith.constant 2 : index
    %c0_17 = arith.constant 0 : index
    %c0_18 = arith.constant 0 : index
    %27 = vector.load %arg2[%c2, %c0_17, %c0_18] : memref<3x128x128xf32, #tpu.memory_space<vmem>>, vector<1x128x128xf32>
    %28 = vector.shape_cast %27 : vector<1x128x128xf32> to vector<128x128xf32>
    %cst_19 = arith.constant dense<0.000000e+00> : vector<8x128xf32>
    %29 = tpu.matmul %26, %28, %cst_19 {dimension_numbers = #tpu.dot_dimension_numbers<[1], [0], [0], [1], [0, 0, 1, 1], [], []>} : vector<8x128xf32>, vector<128x128xf32>, vector<8x128xf32> -> vector<8x128xf32>
    %c2_20 = arith.constant 2 : index
    %c0_21 = arith.constant 0 : index
    %c0_22 = arith.constant 0 : index
    %30 = vector.load %arg3[%c2_20, %c0_21, %c0_22] : memref<3x1x128xf32, #tpu.memory_space<vmem>>, vector<1x1x128xf32>
    %31 = vector.shape_cast %30 : vector<1x1x128xf32> to vector<1x128xf32>
    %32 = vector.broadcast %31 : vector<1x128xf32> to vector<8x128xf32>
    %33 = arith.addf %29, %32 : vector<8x128xf32>
    %34 = arith.negf %33 : vector<8x128xf32>
    %35 = math.exp %34 : vector<8x128xf32>
    %cst_23 = arith.constant 1.000000e+00 : f32
    %36 = vector.broadcast %cst_23 : f32 to vector<8x128xf32>
    %37 = arith.addf %36, %35 : vector<8x128xf32>
    %38 = arith.divf %36, %37 : vector<8x128xf32>
    %c0_24 = arith.constant 0 : index
    %c0_25 = arith.constant 0 : index
    %39 = vector.load %arg4[%c0_24, %c0_25] : memref<8x128xf32, #tpu.memory_space<vmem>>, vector<8x128xf32>
    tpu.vector_store %arg4[%c0_24, %c0_25], %38 {strides = array<i32>} : memref<8x128xf32, #tpu.memory_space<vmem>>, vector<8x128xf32>,
    return
  }
}

</mosaic_0001>

<bundles_post_ra>
// kernel: fully_connected_net.1
= control target key start
LH: loop header
LB: loop body
LE: loop exit
PB: predicated region body
PF: predicated region fallthrough
CT: control target
= control target key end

     0   :  { %9 = vsyncpa [#allocation4], 0  ;;  %s727_s0 = inlined_call_operand.vmem [shape: f32[2], index: 0, kind: input, shape index: {}]   ;;  %s728_s1 = inlined_call_operand.vmem [shape: f32[8,128], index: 1, kind: input, shape index: {}]   ;;  %s729_s2 = inlined_call_operand.hbm [shape: f32[3,128,128], index: 2, kind: input, shape index: {}]   ;;  %s730_s3 = inlined_call_operand.vmem [shape: f32[3,1,128], index: 3, kind: input, shape index: {}]   ;;  %s731_s4 = inlined_call_operand.vmem [shape: f32[8,128], index: 4, kind: output, shape index: {}]  }
   0x1   :  { %s17_s17 = sshll.u32 %s727_s0, 4  ;;  %s18_s17 = int_to_ptr.vmem [resolvable:$true] %s17_s17 }
   0x2   :  { %10 = vsyncpa [#allocation3], 0  ;;  %s597_s18 = scalar_lea.vmem %s18_s17, 16  ;;  %p602_p1 = scmp.lt.s32.totalorder %s18_s17, %s18_s17 }
   0x3   :  { %p598_p0 = scmp.ne.s32.totalorder %s18_s17, %s597_s18  ;;  %p603_p2 = scmp.lt.s32.totalorder %s597_s18, %s597_s18 }
   0x5   :  { %p604_p3 = por %p603_p2, %p602_p1 }
   0x7   :  { %p605_p4 = pnand %p604_p3, %p598_p0 }
   0x9   :  { %608 = shalt.err (!%p605_p4)
}
   0xa   :  { %s635_s19 = smov [#allocation2]   ;;  %s636_s20 = smov [#allocation5]  }
   0xb   :  { %20 = dma.vmem_to_smem %s18_s17, 16, %s635_s19, [#allocation4]  }
   0xc   :  { %s28_s21 = sshll.u32 %s636_s20, 4  ;;  %s609_s24 = scalar_lea.hbm %s729_s2, 6144  ;;  %s29_s21 = int_to_ptr.vmem [resolvable:$true] %s28_s21 }
   0xd   :  { %p610_p5 = scmp.ne.s32.totalorder %s729_s2, %s609_s24  ;;  %p613_p6 = scmp.lt.u32.totalorder %s609_s24, %s729_s2 }
   0xf   :  { %p615_p7 = pnand %p613_p6, %p610_p5 }
  0x11   :  { %618 = shalt.err (!%p615_p7)
}
  0x12   :  { %s619_s28 = scalar_lea.vmem %s29_s21, 6144  ;;  %p624_p9 = scmp.lt.s32.totalorder %s29_s21, %s29_s21 }
  0x13   :  { %p620_p8 = scmp.ne.s32.totalorder %s29_s21, %s619_s28  ;;  %p625_p10 = scmp.lt.s32.totalorder %s619_s28, %s619_s28 }
  0x15   :  { %p626_p11 = por %p625_p10, %p624_p9 }
  0x17   :  { %p627_p12 = pnand %p626_p11, %p620_p8 }
  0x19   :  { %630 = shalt.err (!%p627_p12)
}
  0x1a   :  { %s637_s29 = smov 128   ;;  %s638_s30 = smov 8  }
  0x1b   :  { %34 = dma.hbm_to_vmem [thread:$0]  %s729_s2, 6144, %s29_s21, [#allocation3], %s637_s29, %s637_s29, %s638_s30  }
  0x1c   :  { %631 = dma.done.wait [#allocation4], 16  }
  0x1d   :  { %632 = vsyncadd [#allocation4], 4294967280 }
  0x1e   :  { %633 = dma.done.wait [#allocation3], 6144  }
  0x1f   :  { %634 = vsyncadd [#allocation3], 4294961152 }
  0x20   :  { %43 = sfence }
  0x21   :  { %v45_v0 = vld [vmem:[#allocation5] sm:$0xff]  ;;  %v46_v1 = vld [vmem:[#allocation5 + $0x8] sm:$0xff]  ;;  %v47_v2 = vld [vmem:[#allocation5 + $0x10] sm:$0xff]  ;;  %v639_v3 = vmov 0.0|0.0   ;;  %vm640_vm0 = vmmov 0   ;;  %v641_v6 = vmov 0.0  }
  0x22   :  { %514 = vmatprep.subr.bf16.mxu0 %v639_v3  ;;  %v515_v4 = vpack.c.bf16 %v46_v1, %v45_v0  ;;  %v48_v5 = vld [vmem:[#allocation5 + $0x18] sm:$0xff]  ;;  %441 = vmatprep.mubr.msk.f32.mxu0 %vm640_vm0, %v641_v6  ;;  %v49_v8 = vld [vmem:[#allocation5 + $0x20] sm:$0xff]  ;;  %v50_v9 = vld [vmem:[#allocation5 + $0x28] sm:$0xff]  ;;  %s354_s10 = sld [smem:[#allocation2 + $0x1]] }
  0x23   :  { %538 = vmatprep.subr.bf16.mxu1 %v639_v3  ;;  %476 = vmatprep.mubr.msk.f32.mxu1 %vm640_vm0, %v641_v6  ;;  %v518_v7 = vpack.c.bf16 %v48_v5, %v47_v2  ;;  %v144_v10 = vld [vmem:[#allocation5 + $0x80] sm:$0xff]  ;;  %v145_v11 = vld [vmem:[#allocation5 + $0x88] sm:$0xff]  ;;  %v146_v12 = vld [vmem:[#allocation5 + $0x90] sm:$0xff]  ;;  %v521_v14 = vpack.c.bf16 %v50_v9, %v49_v8 }
  0x24   :  { %516 = vmatpush3.bf16.msra.mxu0 %v515_v4  ;;  %v147_v13 = vld [vmem:[#allocation5 + $0x98] sm:$0xff]  ;;  %v539_v15 = vpack.c.bf16 %v145_v11, %v144_v10  ;;  %v51_v16 = vld [vmem:[#allocation5 + $0x30] sm:$0xff]  ;;  %v148_v19 = vld [vmem:[#allocation5 + $0xa0] sm:$0xff] }
  0x25   :  { %517 = vmatprep.subr.bf16.mxu0 %v639_v3  ;;  %v52_v17 = vld [vmem:[#allocation5 + $0x38] sm:$0xff]  ;;  %v542_v18 = vpack.c.bf16 %v147_v13, %v146_v12  ;;  %v149_v20 = vld [vmem:[#allocation5 + $0xa8] sm:$0xff]  ;;  %v53_v22 = vld [vmem:[#allocation5 + $0x40] sm:$0xff] }
  0x26   :  { %540 = vmatpush3.bf16.msra.mxu1 %v539_v15  ;;  %v524_v21 = vpack.c.bf16 %v52_v17, %v51_v16  ;;  %v54_v23 = vld [vmem:[#allocation5 + $0x48] sm:$0xff]  ;;  %v545_v24 = vpack.c.bf16 %v149_v20, %v148_v19  ;;  %v150_v25 = vld [vmem:[#allocation5 + $0xb0] sm:$0xff]  ;;  %v151_v26 = vld [vmem:[#allocation5 + $0xb8] sm:$0xff] }
  0x27   :  { %541 = vmatprep.subr.bf16.mxu1 %v639_v3  ;;  %v527_v27 = vpack.c.bf16 %v54_v23, %v53_v22  ;;  %v55_v28 = vld [vmem:[#allocation5 + $0x50] sm:$0xff]  ;;  %v56_v29 = vld [vmem:[#allocation5 + $0x58] sm:$0xff]  ;;  %v548_v30 = vpack.c.bf16 %v151_v26, %v150_v25  ;;  %v152_v31 = vld [vmem:[#allocation5 + $0xc0] sm:$0xff] }
  0x28   :  { %519 = vmatpush3.bf16.msra.mxu0 %v518_v7  ;;  %v153_v32 = vld [vmem:[#allocation5 + $0xc8] sm:$0xff]  ;;  %v530_v33 = vpack.c.bf16 %v56_v29, %v55_v28  ;;  %v57_v34 = vld [vmem:[#allocation5 + $0x60] sm:$0xff]  ;;  %v154_v37 = vld [vmem:[#allocation5 + $0xd0] sm:$0xff]  ;;  %v240_v20 = vstv %s354_s10 }
  0x29   :  { %520 = vmatprep.subr.bf16.mxu0 %v639_v3  ;;  %v58_v35 = vld [vmem:[#allocation5 + $0x68] sm:$0xff]  ;;  %v551_v36 = vpack.c.bf16 %v153_v32, %v152_v31  ;;  %v155_v38 = vld [vmem:[#allocation5 + $0xd8] sm:$0xff]  ;;  %v59_v40 = vld [vmem:[#allocation5 + $0x70] sm:$0xff] }
  0x2a   :  { %543 = vmatpush3.bf16.msra.mxu1 %v542_v18  ;;  %v533_v39 = vpack.c.bf16 %v58_v35, %v57_v34  ;;  %v60_v41 = vld [vmem:[#allocation5 + $0x78] sm:$0xff]  ;;  %v554_v42 = vpack.c.bf16 %v155_v38, %v154_v37  ;;  %v156_v43 = vld [vmem:[#allocation5 + $0xe0] sm:$0xff]  ;;  %v157_v44 = vld [vmem:[#allocation5 + $0xe8] sm:$0xff] }
  0x2b   :  { %544 = vmatprep.subr.bf16.mxu1 %v639_v3  ;;  %v536_v45 = vpack.c.bf16 %v60_v41, %v59_v40  ;;  %v557_v46 = vpack.c.bf16 %v157_v44, %v156_v43  ;;  %v44_v47 = vld [vmem:[%s728_s1] sm:$0xff]  ;;  %v158_v48 = vld [vmem:[#allocation5 + $0xf0] sm:$0xff]  ;;  %v159_v49 = vld [vmem:[#allocation5 + $0xf8] sm:$0xff]  ;;  %s138_s1 = sld [smem:[#allocation2]] }
  0x2c   :  { %522 = vmatpush3.bf16.msra.mxu0 %v521_v14  ;;  %v560_v50 = vpack.c.bf16 %v159_v49, %v158_v48  ;;  %v244_v51 = vld [vmem:[#allocation5 + $0x100] sm:$0xff]  ;;  %v245_v52 = vld [vmem:[#allocation5 + $0x108] sm:$0xff]  ;;  %v246_v53 = vld [vmem:[#allocation5 + $0x110] sm:$0xff] }
  0x2d   :  { %523 = vmatprep.subr.bf16.mxu0 %v639_v3  ;;  %v563_v54 = vpack.c.bf16 %v245_v52, %v244_v51  ;;  %v247_v55 = vld [vmem:[#allocation5 + $0x118] sm:$0xff]  ;;  %v248_v57 = vld [vmem:[#allocation5 + $0x120] sm:$0xff]  ;;  %v249_v58 = vld [vmem:[#allocation5 + $0x128] sm:$0xff] }
  0x2e   :  { %546 = vmatpush3.bf16.msra.mxu1 %v545_v24  ;;  %v566_v56 = vpack.c.bf16 %v247_v55, %v246_v53  ;;  %v569_v59 = vpack.c.bf16 %v249_v58, %v248_v57  ;;  %v250_v60 = vld [vmem:[#allocation5 + $0x130] sm:$0xff]  ;;  %v251_v61 = vld [vmem:[#allocation5 + $0x138] sm:$0xff]  ;;  %v252_v63 = vld [vmem:[#allocation5 + $0x140] sm:$0xff] }
  0x2f   :  { %547 = vmatprep.subr.bf16.mxu1 %v639_v3  ;;  %v572_v62 = vpack.c.bf16 %v251_v61, %v250_v60  ;;  %v253_v0 = vld [vmem:[#allocation5 + $0x148] sm:$0xff]  ;;  %v254_v2 = vld [vmem:[#allocation5 + $0x150] sm:$0xff]  ;;  %v255_v4 = vld [vmem:[#allocation5 + $0x158] sm:$0xff] }
  0x30   :  { %525 = vmatpush3.bf16.msra.mxu0 %v524_v21  ;;  %v575_v1 = vpack.c.bf16 %v253_v0, %v252_v63  ;;  %v578_v5 = vpack.c.bf16 %v255_v4, %v254_v2  ;;  %v257_v7 = vld [vmem:[#allocation5 + $0x168] sm:$0xff]  ;;  %v351_v9 = vld [vmem:[%s730_s3] ss:$0 sm:$0xff]  ;;  %v258_v16 = vld [vmem:[#allocation5 + $0x170] sm:$0xff] }
  0x31   :  { %526 = vmatprep.subr.bf16.mxu0 %v639_v3  ;;  %v140_v11 = vstv %s138_s1  ;;  %v259_v17 = vld [vmem:[#allocation5 + $0x178] sm:$0xff]  ;;  %v356_v25 = vld [vmem:[%s730_s3 + $0x2] ss:$0 sm:$0xff] }
  0x32   :  { %549 = vmatpush3.bf16.msra.mxu1 %v548_v30  ;;  %v584_v18 = vpack.c.bf16 %v259_v17, %v258_v16 }
  0x33   :  { %550 = vmatprep.subr.bf16.mxu1 %v639_v3 }
  0x34   :  { %528 = vmatpush3.bf16.msra.mxu0 %v527_v27 }
  0x35   :  { %529 = vmatprep.subr.bf16.mxu0 %v639_v3 }
  0x36   :  { %552 = vmatpush3.bf16.msra.mxu1 %v551_v36 }
  0x37   :  { %553 = vmatprep.subr.bf16.mxu1 %v639_v3 }
  0x38   :  { %531 = vmatpush3.bf16.msra.mxu0 %v530_v33 }
  0x39   :  { %532 = vmatprep.subr.bf16.mxu0 %v639_v3 }
  0x3a   :  { %555 = vmatpush3.bf16.msra.mxu1 %v554_v42 }
  0x3b   :  { %556 = vmatprep.subr.bf16.mxu1 %v639_v3 }
  0x3c   :  { %534 = vmatpush3.bf16.msra.mxu0 %v533_v39 }
  0x3d   :  { %535 = vmatprep.subr.bf16.mxu0 %v639_v3 }
  0x3e   :  { %558 = vmatpush3.bf16.msra.mxu1 %v557_v46 }
  0x3f   :  { %559 = vmatprep.subr.bf16.mxu1 %v639_v3 }
  0x40   :  { %537 = vmatpush3.bf16.msra.mxu0 %v536_v45 }
  0x41   :  { %562 = vmatprep.subr.bf16.mxu0 %v639_v3 }
  0x42   :  { %561 = vmatpush3.bf16.msra.mxu1 %v560_v50 }
  0x43   :  { %442 = vmatmul.mubr.f32.vlgmr.msra.gmra.mrb[0].mxu0 %v44_v47 }
  0x44   :  { %511 = vmatprep.mubr.msk.f32.mxu0 %vm640_vm0, %v641_v6  ;;  %564 = vmatpush3.bf16.msra.mxu0 %v563_v54  ;;  %v256_v6 = vld [vmem:[#allocation5 + $0x160] sm:$0xff] }
  0x45   :  { %565 = vmatprep.subr.bf16.mxu0 %v639_v3  ;;  %v581_v8 = vpack.c.bf16 %v257_v7, %v256_v6 }
  0x48   :  { %567 = vmatpush3.bf16.msra.mxu0 %v566_v56 }
  0x49   :  { %568 = vmatprep.subr.bf16.mxu0 %v639_v3 }
  0x4c   :  { %570 = vmatpush3.bf16.msra.mxu0 %v569_v59 }
  0x4d   :  { %571 = vmatprep.subr.bf16.mxu0 %v639_v3 }
  0x50   :  { %573 = vmatpush3.bf16.msra.mxu0 %v572_v62 }
  0x51   :  { %574 = vmatprep.subr.bf16.mxu0 %v639_v3 }
  0x54   :  { %576 = vmatpush3.bf16.msra.mxu0 %v575_v1 }
  0x55   :  { %577 = vmatprep.subr.bf16.mxu0 %v639_v3 }
  0x58   :  { %579 = vmatpush3.bf16.msra.mxu0 %v578_v5 }
  0x59   :  { %580 = vmatprep.subr.bf16.mxu0 %v639_v3 }
  0x5c   :  { %582 = vmatpush3.bf16.msra.mxu0 %v581_v8 }
  0x5d   :  { %583 = vmatprep.subr.bf16.mxu0 %v639_v3  ;;  %v353_v3 = vld [vmem:[%s730_s3 + $0x1] ss:$0 sm:$0xff] }
  0x60   :  { %585 = vmatpush3.bf16.msra.mxu0 %v584_v18 }
 0x116   :  { %v134_v10 = vpop.f32.mrb[0].mxu0 }
 0x117   :  { %v135_v12 = vadd.f32 %v351_v9, %v134_v10  ;;  %v443_v13 = vpop.f32.mrb[1].mxu0 }
 0x119   :  { %v141_v14 = vmul.f32 %v140_v11, %v135_v12  ;;  %vm139_vm1 = vcmp.gt.f32.partialorder %v135_v12, 0.0 }
 0x11b   :  { %v142_v15 = vsel %vm139_vm1, %v135_v12, %v141_v14 }
 0x11c   :  { %477 = vmatmul.mubr.f32.vlgmr.msra.gmra.mrb[0].mxu1 %v142_v15 }
 0x1ef   :  { %v234_v19 = vpop.f32.mrb[0].mxu1 }
 0x1f0   :  { %v235_v21 = vadd.f32 %v353_v3, %v234_v19  ;;  %v478_v22 = vpop.f32.mrb[1].mxu1 }
 0x1f2   :  { %vm239_vm2 = vcmp.gt.f32.partialorder %v235_v21, 0.0  ;;  %v241_v23 = vmul.f32 %v240_v20, %v235_v21 }
 0x1f4   :  { %v242_v24 = vsel %vm239_vm2, %v235_v21, %v241_v23 }
 0x1f5   :  { %512 = vmatmul.mubr.f32.vlgmr.msra.gmra.mrb[2].mxu0 %v242_v24 }
 0x2c8   :  { %v334_v26 = vpop.f32.mrb[2].mxu0 }
 0x2c9   :  { %v335_v27 = vadd.f32 %v356_v25, %v334_v26  ;;  %v513_v28 = vpop.f32.mrb[3].mxu0 }
 0x2cb   :  { %v357_v29 = vmul.f32 -1.442695, %v335_v27 }
 0x2cd   :  { %593 = vpow2.f32 %v357_v29 }
 0x2d7   :  { %v594_v30 = vpop.eup %593 }
 0x2d8   :  { %v341_v31 = vadd.f32 1.0, %v594_v30 }
 0x2da   :  { %595 = vrcp.f32 %v341_v31 }
 0x2e4   :  { %v596_v32 = vpop.eup %595 }
 0x2e5   :  { %344 = vst [vmem:[%s731_s4] sm:$0xff] %v596_v32 }
 0x2e6   :  { %349 = vsyncpa [#allocation3], 1 }
 0x2e7   :  { %350 = vsyncpa [#allocation4], 1 }

</bundles_post_ra>
